<compile_context>
chip_gen: v7x
topology: tpu7x:2x2x1
jax: 0.10.0
libtpu: 0.0.40
codegen_flags: <defaults>
</compile_context>

<pallas_src>
import functools

import jax
import jax.numpy as jnp
from jax.experimental import pallas as pl
from jax.experimental.pallas import tpu as pltpu


def _conv_bn_act_kernel(x_ref, w_ref, scale_ref, bias_ref, o_ref, *, K, stride):
    # x_ref:     (1, TH_in, Wp, Cin)   bf16 row-tile of the padded input (with K-1 halo rows)
    # w_ref:     (K*K*Cin, TCO)        bf16 im2col-ordered weights for this Cout tile
    # scale_ref: (1, TCO) f32 folded-BN scale     bias_ref: (1, TCO) f32 folded-BN bias
    # o_ref:     (1, TH, Wo, TCO)      f32 output tile (lane-dense: TCO is a multiple of 128)
    TH, Wo, TCO = o_ref.shape[1], o_ref.shape[2], o_ref.shape[3]
    x = x_ref[0]                      # (TH_in, Wp, Cin)
    Cin = x.shape[-1]

    # im2col: one (TH*Wo, K*K*Cin) patch matrix -> a single MXU matmul.
    cols = []
    for kh in range(K):
        for kw in range(K):
            sub = x[kh: kh + stride * (TH - 1) + 1: stride,
                    kw: kw + stride * (Wo - 1) + 1: stride, :]      # (TH, Wo, Cin)
            cols.append(sub.reshape(TH * Wo, Cin))
    patch = jnp.concatenate(cols, axis=-1)                           # (TH*Wo, K*K*Cin) bf16

    acc = jnp.dot(patch, w_ref[...], preferred_element_type=jnp.float32)  # (TH*Wo, TCO) f32

    # Folded BatchNorm (eval) + LeakyReLU(0.1), f32 epilogue.
    y = acc * scale_ref[...] + bias_ref[...]
    y = jnp.where(y > 0, y, 0.1 * y)
    o_ref[0] = y.reshape(TH, Wo, TCO).astype(o_ref.dtype)


def conv_bn_leakyrelu(x_nchw, w_oihw, gamma, beta, running_mean, running_var,
                      stride=1, eps=1e-5):
    """Pallas implementation of Conv.forward (conv -> BN(eval) -> LeakyReLU(0.1)), groups=1."""
    N, C1, H, W = x_nchw.shape
    C2, C1w, K, Kw = w_oihw.shape
    assert C1 == C1w and K == Kw
    p = K // 2  # autopad (odd k; YOLOv5 uses k=1/3 here)
    Ho = (H + 2 * p - K) // stride + 1
    Wo = (W + 2 * p - K) // stride + 1

    # ---- tiling choices ----
    LANES = 128
    Cout_p = ((C2 + LANES - 1) // LANES) * LANES       # lane-dense output channels
    TCO = LANES
    n_co = Cout_p // TCO
    TH = next(t for t in (8, 4, 2, 1) if Ho % t == 0)  # output rows per grid step
    n_h = Ho // TH
    TH_in = stride * (TH - 1) + K                       # input rows needed (incl. halo)

    # ---- wrapper glue: layout transforms + BN folding (plain JAX) ----
    x_nhwc = jnp.transpose(x_nchw, (0, 2, 3, 1)).astype(jnp.bfloat16)
    x_pad = jnp.pad(x_nhwc, ((0, 0), (p, p), (p, p), (0, 0)))
    Hp, Wp = x_pad.shape[1], x_pad.shape[2]
    # TODO(synk): fold the pad + halo duplication into the kernel (masked loads / clamped
    # index_map) to remove this extra HBM pass over the activation.
    row_idx = (jnp.arange(n_h) * (TH * stride))[:, None] + jnp.arange(TH_in)[None, :]
    x_tiles = x_pad[:, row_idx]                                   # (N, n_h, TH_in, Wp, C1)
    x_tiles = x_tiles.reshape(N * n_h, TH_in, Wp, C1)

    # Weights: OIHW -> (K, K, Cin, Cout) -> (K*K*Cin, Cout), zero-pad Cout to Cout_p, bf16.
    w_mat = jnp.transpose(w_oihw, (2, 3, 1, 0)).reshape(K * K * C1, C2)
    w_mat = jnp.pad(w_mat, ((0, 0), (0, Cout_p - C2))).astype(jnp.bfloat16)

    inv_std = (gamma / jnp.sqrt(running_var + eps)).astype(jnp.float32)
    scale = jnp.pad(inv_std, (0, Cout_p - C2)).reshape(1, Cout_p)
    bias = jnp.pad((beta - running_mean * inv_std).astype(jnp.float32),
                   (0, Cout_p - C2)).reshape(1, Cout_p)

    # TODO(synk): for stride-2 layers, do space-to-depth in the wrapper so the kernel is
    # always stride-1 with a denser Cin; for Cin>=512 add an "arbitrary" Cin-reduction grid
    # axis with a VMEM f32 accumulator.

    kernel = functools.partial(_conv_bn_act_kernel, K=K, stride=stride)

    flops = 2 * N * Ho * Wo * K * K * C1 * Cout_p
    bytes_accessed = (x_tiles.size * 2 + w_mat.size * 2 + 2 * Cout_p * 4
                      + N * Ho * Wo * Cout_p * 4)

    # VMEM budget: double-buffered input & output tiles + (small) resident weight/scale/bias.
    vmem_bytes = (2 * TH_in * Wp * C1 * 2 + 2 * TH * Wo * TCO * 4
                  + 2 * K * K * C1 * TCO * 2 + 4 * TCO * 4)
    vmem_limit = int(min(max(4 * vmem_bytes, 8 << 20), 48 << 20))

    out_full = pl.pallas_call(
        kernel,
        out_shape=jax.ShapeDtypeStruct((N, Ho, Wo, Cout_p), jnp.float32),
        grid_spec=pltpu.PrefetchScalarGridSpec(
            num_scalar_prefetch=0,
            grid=(N, n_co, n_h),
            in_specs=[
                pl.BlockSpec((1, TH_in, Wp, C1), lambda n, c, h: (n * n_h + h, 0, 0, 0)),
                pl.BlockSpec((K * K * C1, TCO), lambda n, c, h: (0, c)),
                pl.BlockSpec((1, TCO), lambda n, c, h: (0, c)),
                pl.BlockSpec((1, TCO), lambda n, c, h: (0, c)),
            ],
            out_specs=pl.BlockSpec((1, TH, Wo, TCO), lambda n, c, h: (n, h, 0, c)),
        ),
        compiler_params=pltpu.CompilerParams(
            dimension_semantics=("parallel", "parallel", "parallel"),
            vmem_limit_bytes=vmem_limit),
        cost_estimate=pl.CostEstimate(flops=flops, transcendentals=0,
                                      bytes_accessed=bytes_accessed),
    )(x_tiles, w_mat, scale, bias)

    out_nhwc = out_full[..., :C2]
    return jnp.transpose(out_nhwc, (0, 3, 1, 2)).astype(x_nchw.dtype)  # back to NCHW


def _reference(x, w, gamma, beta, rm, rv, stride, eps=1e-5):
    K = w.shape[2]
    p = K // 2
    y = jax.lax.conv_general_dilated(
        x, w, window_strides=(stride, stride), padding=[(p, p), (p, p)],
        dimension_numbers=("NCHW", "OIHW", "NCHW"),
        precision=jax.lax.Precision.HIGHEST)
    scale = gamma / jnp.sqrt(rv + eps)
    bias = beta - rm * scale
    y = y * scale[None, :, None, None] + bias[None, :, None, None]
    return jnp.where(y > 0, y, 0.1 * y)


if __name__ == "__main__":
    # Conv(c1=4, c2=8, k=3, s=1) on a (2, 4, 16, 16) NCHW input.
    N, C1, H, W = 2, 4, 16, 16
    C2, K, S = 8, 3, 1

    key = jax.random.PRNGKey(0)
    kx, kw, kg, kb, km, kv = jax.random.split(key, 6)

    x = jax.random.normal(kx, (N, C1, H, W), dtype=jnp.float32)
    fan_in = C1 * K * K
    w = jax.random.normal(kw, (C2, C1, K, K), dtype=jnp.float32) * (1.0 / fan_in) ** 0.5
    gamma = 1.0 + 0.1 * jax.random.normal(kg, (C2,), dtype=jnp.float32)
    beta = 0.1 * jax.random.normal(kb, (C2,), dtype=jnp.float32)
    running_mean = 0.1 * jax.random.normal(km, (C2,), dtype=jnp.float32)
    running_var = jax.nn.softplus(jax.random.normal(kv, (C2,), dtype=jnp.float32)) + 0.5

    out = conv_bn_leakyrelu(x, w, gamma, beta, running_mean, running_var, stride=S)
    out = jax.block_until_ready(out)

    # Compare against a reference evaluated on the same bf16-rounded operands
    # (kernel feeds the MXU bf16 inputs with f32 accumulation).
    x_r = x.astype(jnp.bfloat16).astype(jnp.float32)
    w_r = w.astype(jnp.bfloat16).astype(jnp.float32)
    ref = _reference(x_r, w_r, gamma, beta, running_mean, running_var, S)
    assert out.shape == ref.shape
    assert jnp.allclose(out, ref, atol=1e-3, rtol=1e-3), "mismatch vs reference"

    print("KERNEL_OK")
</pallas_src>

<mosaic_0001>
module attributes {stable_mosaic.version = 11 : i64} {
  func.func @_conv_bn_act_kernel(%arg0: i32, %arg1: i32, %arg2: i32, %arg3: memref<1x10x18x4xbf16, #tpu.memory_space<vmem>>, %arg4: memref<36x128xbf16, #tpu.memory_space<vmem>>, %arg5: memref<1x128xf32, #tpu.memory_space<vmem>>, %arg6: memref<1x128xf32, #tpu.memory_space<vmem>>, %arg7: memref<1x8x16x128xf32, #tpu.memory_space<vmem>>) attributes {dimension_semantics = [#tpu.dimension_semantics<parallel>, #tpu.dimension_semantics<parallel>, #tpu.dimension_semantics<parallel>], iteration_bounds = array<i64: 2, 1, 2>, scalar_prefetch = 0 : i64, scratch_operands = 0 : i64, tpu.core_type = #tpu.core_type<tc>, window_params = [{transform_indices = @transform_0, window_bounds = array<i64: 1, 10, 18, 4>}, {transform_indices = @transform_1, window_bounds = array<i64: 36, 128>}, {transform_indices = @transform_2, window_bounds = array<i64: 1, 128>}, {transform_indices = @transform_3, window_bounds = array<i64: 1, 128>}, {transform_indices = @transform_4, window_bounds = array<i64: 1, 8, 16, 128>}]} {
    %c0 = arith.constant 0 : index
    %c0_0 = arith.constant 0 : index
    %c0_1 = arith.constant 0 : index
    %c0_2 = arith.constant 0 : index
    %0 = vector.load %arg3[%c0, %c0_0, %c0_1, %c0_2] : memref<1x10x18x4xbf16, #tpu.memory_space<vmem>>, vector<1x10x18x4xbf16>
    %1 = vector.shape_cast %0 : vector<1x10x18x4xbf16> to vector<10x18x4xbf16>
    %2 = vector.extract_strided_slice %1 {offsets = [0, 0, 0], sizes = [8, 16, 4], strides = [1, 1, 1]} : vector<10x18x4xbf16> to vector<8x16x4xbf16>
    %3 = vector.shape_cast %2 : vector<8x16x4xbf16> to vector<128x4xbf16>
    %4 = vector.extract_strided_slice %1 {offsets = [0, 1, 0], sizes = [8, 16, 4], strides = [1, 1, 1]} : vector<10x18x4xbf16> to vector<8x16x4xbf16>
    %5 = vector.shape_cast %4 : vector<8x16x4xbf16> to vector<128x4xbf16>
    %6 = vector.extract_strided_slice %1 {offsets = [0, 2, 0], sizes = [8, 16, 4], strides = [1, 1, 1]} : vector<10x18x4xbf16> to vector<8x16x4xbf16>
    %7 = vector.shape_cast %6 : vector<8x16x4xbf16> to vector<128x4xbf16>
    %8 = vector.extract_strided_slice %1 {offsets = [1, 0, 0], sizes = [8, 16, 4], strides = [1, 1, 1]} : vector<10x18x4xbf16> to vector<8x16x4xbf16>
    %9 = vector.shape_cast %8 : vector<8x16x4xbf16> to vector<128x4xbf16>
    %10 = vector.extract_strided_slice %1 {offsets = [1, 1, 0], sizes = [8, 16, 4], strides = [1, 1, 1]} : vector<10x18x4xbf16> to vector<8x16x4xbf16>
    %11 = vector.shape_cast %10 : vector<8x16x4xbf16> to vector<128x4xbf16>
    %12 = vector.extract_strided_slice %1 {offsets = [1, 2, 0], sizes = [8, 16, 4], strides = [1, 1, 1]} : vector<10x18x4xbf16> to vector<8x16x4xbf16>
    %13 = vector.shape_cast %12 : vector<8x16x4xbf16> to vector<128x4xbf16>
    %14 = vector.extract_strided_slice %1 {offsets = [2, 0, 0], sizes = [8, 16, 4], strides = [1, 1, 1]} : vector<10x18x4xbf16> to vector<8x16x4xbf16>
    %15 = vector.shape_cast %14 : vector<8x16x4xbf16> to vector<128x4xbf16>
    %16 = vector.extract_strided_slice %1 {offsets = [2, 1, 0], sizes = [8, 16, 4], strides = [1, 1, 1]} : vector<10x18x4xbf16> to vector<8x16x4xbf16>
    %17 = vector.shape_cast %16 : vector<8x16x4xbf16> to vector<128x4xbf16>
    %18 = vector.extract_strided_slice %1 {offsets = [2, 2, 0], sizes = [8, 16, 4], strides = [1, 1, 1]} : vector<10x18x4xbf16> to vector<8x16x4xbf16>
    %19 = vector.shape_cast %18 : vector<8x16x4xbf16> to vector<128x4xbf16>
    %20 = tpu.concatenate %3, %5, %7, %9, %11, %13, %15, %17, %19 in 1 : vector<128x4xbf16>, vector<128x4xbf16>, vector<128x4xbf16>, vector<128x4xbf16>, vector<128x4xbf16>, vector<128x4xbf16>, vector<128x4xbf16>, vector<128x4xbf16>, vector<128x4xbf16> -> vector<128x36xbf16>
    %c0_3 = arith.constant 0 : index
    %c0_4 = arith.constant 0 : index
    %21 = vector.load %arg4[%c0_3, %c0_4] : memref<36x128xbf16, #tpu.memory_space<vmem>>, vector<36x128xbf16>
    %cst = arith.constant dense<0.000000e+00> : vector<128x128xf32>
    %22 = tpu.matmul %20, %21, %cst {dimension_numbers = #tpu.dot_dimension_numbers<[1], [0], [0], [1], [0, 0, 1, 1], [], []>} : vector<128x36xbf16>, vector<36x128xbf16>, vector<128x128xf32> -> vector<128x128xf32>
    %c0_5 = arith.constant 0 : index
    %c0_6 = arith.constant 0 : index
    %23 = vector.load %arg5[%c0_5, %c0_6] : memref<1x128xf32, #tpu.memory_space<vmem>>, vector<1x128xf32>
    %24 = vector.broadcast %23 : vector<1x128xf32> to vector<128x128xf32>
    %25 = arith.mulf %22, %24 : vector<128x128xf32>
    %c0_7 = arith.constant 0 : index
    %c0_8 = arith.constant 0 : index
    %26 = vector.load %arg6[%c0_7, %c0_8] : memref<1x128xf32, #tpu.memory_space<vmem>>, vector<1x128xf32>
    %27 = vector.broadcast %26 : vector<1x128xf32> to vector<128x128xf32>
    %28 = arith.addf %25, %27 : vector<128x128xf32>
    %cst_9 = arith.constant 0.000000e+00 : f32
    %29 = vector.broadcast %cst_9 : f32 to vector<128x128xf32>
    %30 = arith.cmpf ogt, %28, %29 : vector<128x128xf32>
    %cst_10 = arith.constant 1.000000e-01 : f32
    %31 = vector.broadcast %cst_10 : f32 to vector<128x128xf32>
    %32 = arith.mulf %31, %28 : vector<128x128xf32>
    %33 = arith.select %30, %28, %32 : vector<128x128xi1>, vector<128x128xf32>
    %34 = vector.shape_cast %33 : vector<128x128xf32> to vector<8x16x128xf32>
    %c0_11 = arith.constant 0 : index
    %c0_12 = arith.constant 0 : index
    %c0_13 = arith.constant 0 : index
    %c0_14 = arith.constant 0 : index
    %35 = vector.load %arg7[%c0_11, %c0_12, %c0_13, %c0_14] : memref<1x8x16x128xf32, #tpu.memory_space<vmem>>, vector<1x8x16x128xf32>
    %36 = vector.shape_cast %35 : vector<1x8x16x128xf32> to vector<8x16x128xf32>
    %37 = vector.shape_cast %34 : vector<8x16x128xf32> to vector<1x8x16x128xf32>
    tpu.vector_store %arg7[%c0_11, %c0_12, %c0_13, %c0_14], %37 {strides = array<i32>} : memref<1x8x16x128xf32, #tpu.memory_space<vmem>>, vector<1x8x16x128xf32>,
    return
  }
  func.func @transform_0(%arg0: i32, %arg1: i32, %arg2: i32) -> (i32, i32, i32, i32) {
    %c2_i32 = arith.constant 2 : i32
    %0 = arith.muli %arg0, %c2_i32 : i32
    %1 = arith.addi %0, %arg2 : i32
    %c0_i32 = arith.constant 0 : i32
    %c0_i32_0 = arith.constant 0 : i32
    %c0_i32_1 = arith.constant 0 : i32
    %c0_i32_2 = arith.constant 0 : i32
    return %1, %c0_i32, %c0_i32_0, %c0_i32_1 : i32, i32, i32, i32
  }
  func.func @transform_1(%arg0: i32, %arg1: i32, %arg2: i32) -> (i32, i32) {
    %c0_i32 = arith.constant 0 : i32
    %c0_i32_0 = arith.constant 0 : i32
    return %c0_i32, %arg1 : i32, i32
  }
  func.func @transform_2(%arg0: i32, %arg1: i32, %arg2: i32) -> (i32, i32) {
    %c0_i32 = arith.constant 0 : i32
    %c0_i32_0 = arith.constant 0 : i32
    return %c0_i32, %arg1 : i32, i32
  }
  func.func @transform_3(%arg0: i32, %arg1: i32, %arg2: i32) -> (i32, i32) {
    %c0_i32 = arith.constant 0 : i32
    %c0_i32_0 = arith.constant 0 : i32
    return %c0_i32, %arg1 : i32, i32
  }
  func.func @transform_4(%arg0: i32, %arg1: i32, %arg2: i32) -> (i32, i32, i32, i32) {
    %c0_i32 = arith.constant 0 : i32
    %c0_i32_0 = arith.constant 0 : i32
    return %arg0, %arg2, %c0_i32, %arg1 : i32, i32, i32, i32
  }
}

</mosaic_0001>

<bundles_post_ra>
// kernel: tpu_custom_call.1
= control target key start
LH: loop header
LB: loop body
LE: loop exit
PB: predicated region body
PF: predicated region fallthrough
CT: control target
= control target key end

     0   :  { %9 = vsyncpa [#allocation3], 0  ;;  %s2512_s0 = inlined_call_operand.vmem [shape: bf16[4,10,18,4], index: 0, kind: input, shape index: {}]   ;;  %s2513_s1 = inlined_call_operand.vmem [shape: bf16[36,128], index: 1, kind: input, shape index: {}]   ;;  %s2514_s2 = inlined_call_operand.vmem [shape: f32[1,128], index: 2, kind: input, shape index: {}]   ;;  %s2515_s3 = inlined_call_operand.vmem [shape: f32[1,128], index: 3, kind: input, shape index: {}]   ;;  %s2516_s4 = inlined_call_operand.hbm [shape: f32[2,16,16,128], index: 4, kind: output, shape index: {}]  }
   0x1   :  { %11 = vsyncpa [#allocation3 + $0x1], 0  ;;  %s1743_s15 = smov 0   ;;  %s1745_s16 = smov 0  }
   0x2   :  { %s1747_s17 = smov 0   ;;  %s1749_s18 = smov 0  }
   0x3   :  { %s1751_s19 = smov 0   ;;  %s1753_s20 = smov 0  }
   0x4   :  { %s1755_s21 = smov 0   ;;  %s1757_s22 = smov 0  }
   0x5 LB: > { %s1403_s23 = sadd.s32 4294967295, %s1706_s22   ;;  %s1404_s24 = sadd.s32 4294967294, %s1706_s22   ;;  %s1706_s22 = sphi %s1757_s22, %s17_s22   ;;  %s1702_s21 = sphi %s1755_s21, %s2529_s21   ;;  %s1698_s20 = sphi %s1753_s20, %s2528_s20   ;;  %s1694_s19 = sphi %s1751_s19, %s2527_s19   ;;  %s1690_s18 = sphi %s1749_s18, %s2526_s18   ;;  %s1686_s17 = sphi %s1747_s17, %s2525_s17   ;;  %s1682_s16 = sphi %s1745_s16, %s2524_s16   ;;  %s1678_s15 = sphi %s1743_s15, %s2523_s15  }
   0x6   : > { %s29_s25 = sadd.s32 1, %s1698_s20  ;;  %s36_s26 = sadd.s32 1, %s1702_s21 }
   0x7   : > { %p30_p0 = scmp.ge.s32.totalorder %s29_s25, 2  ;;  %p165_p1 = scmp.ne.s32.totalorder %s1686_s17, %s1682_s16 }
   0x8   : > { %p166_p2 = scmp.eq.s32.totalorder %s1403_s23, 3  ;;  %p171_p5 = scmp.ne.s32.totalorder %s1682_s16, %s1678_s15 }
   0x9   : > { %s2531_s25 = smov (%p30_p0, %s29_s25), 0  ;;  %s2533_s26 = smov (!%p30_p0, %s36_s26), %s1702_s21 }
   0xa   : > { %s149_s27 = ssub.s32 %s1698_s20, %s2531_s25  ;;  %p1794_p3 = por %p166_p2, %p165_p1 }
   0xb   : > { %p38_p4 = scmp.ge.s32.totalorder %s2533_s26, 2  ;;  %p172_p6 = scmp.eq.s32.totalorder %s1404_s24, 3 }
   0xc   : > { %p1412_p7 = scmp.ge.s32.totalorder %s1706_s22, 1  ;;  %p221_p9 = scmp.lt.s32.totalorder %s1706_s22, 5 }
   0xd   : > { %s2535_s26 = smov (%p38_p4, %s2533_s26), 0  ;;  %p1803_p8 = por %p172_p6, %p171_p5 }
   0xe   : > { %s148_s30 = ssub.s32 %s1702_s21, %s2535_s26  ;;  %s155_s5 = sadd.s32 1, %s1686_s17 }
   0xf   : > { %s150_s6 = sor.u32 %s149_s27, %s148_s30  ;;  %p222_p10 = pnand %p1412_p7, %p221_p9 }
  0x10   : > { %p153_p11 = scmp.eq.s32.totalorder %s150_s6, 0  ;;  %s1414_s8 = sshll.u32 (!%p222_p10), %s1694_s19, 1  ;;  %vm529_vm0 = vcmask (!%p222_p10), 1042432   ;;  %vm530_vm1 = vcmask (!%p222_p10), 1046532   ;;  %vm310_vm2 = vsmask.f32 (!%p222_p10), 3328 }
  0x11   : > { %225 = sbr.rel (%p222_p10) target bundleno = 520 (0x208), region = 36  ;;  %s260_s9 = sadd.s32 (!%p222_p10), %s1690_s18, %s1414_s8  ;;  %vm311_vm3 = vsmask.f32 (!%p222_p10), 7440  ;;  %vm1890_vm4 = vmor (!%p222_p10), %vm529_vm0, %vm530_vm1  ;;  %vm1055_vm6 = vcmask (!%p222_p10), 1041408   ;;  %vm874_vm7 = vcmask (!%p222_p10), 31744   ;;  %vm899_vm8 = vcmask (!%p222_p10), 64512  }
  0x12   : > { %s1812_s7 = scalar_select %p153_p11, %s1686_s17, %s155_s5  }
  0x13   : > { %p261_p12 = scmp.lt.s32.totalorder (!%p222_p10), %s260_s9, 3  ;;  %s1708_s14 = smov (!%p222_p10), 12   ;;  %vm1940_vm5 = vmor (!%p222_p10), %vm310_vm2, %vm311_vm3  ;;  %vm916_vm9 = vcmask (!%p222_p10), 97280   ;;  %vm933_vm10 = vcmask (!%p222_p10), 130048   ;;  %vm950_vm11 = vcmask (!%p222_p10), 162816   ;;  %vm967_vm12 = vcmask (!%p222_p10), 195584  }
  0x14   : > { %s1709_s23 = smov (!%p222_p10), 8   ;;  %s1710_s24 = smov (!%p222_p10), 4   ;;  %vm984_vm13 = vcmask (!%p222_p10), 228352   ;;  %vm1001_vm14 = vcmask (!%p222_p10), 261120   ;;  %vm1038_vm15 = vcmask (!%p222_p10), 293888  }
  0x15   : > { %s1711_s27 = smov (!%p222_p10), 16   ;;  %s1712_s30 = smov (!%p222_p10), 20  }
  0x16   : > { %s1713_s5 = smov (!%p222_p10), 24   ;;  %s1715_s6 = smov (!%p222_p10), 32  }
  0x17   : > { %s1472_s11 = sshll.u32 (!%p222_p10), %s1694_s19, 5 }
  0x18   : > { %s2537_s9 = smov (!%p261_p12, %s260_s9), 3 }
  0x19   : > { %s1518_s10 = smul.u32 120, %s2537_s9  ;;  %s1714_s9 = smov 28  }
  0x1b   : > { %s1819_s13 = scalar_lea.vmem %s2512_s0, %s1518_s10  ;;  %s1476_s10 = sshll.u32 %s1690_s18, 4 }
  0x1c   : > { %v1822_v0 = vld [vmem:[%s1819_s13 + $0x3c] sm:$0xf]  ;;  %v1825_v1 = vld [vmem:[%s1819_s13 + $0x40] sm:$0xf]  ;;  %v1828_v2 = vld [vmem:[%s1819_s13 + $0xc] sm:$0xf]  ;;  %s1281_s18 = sadd.s32 %s1476_s10, %s1472_s11 }
  0x1d   : > { %v447_v3 = vshrl.u32 %v1825_v1, 16  ;;  %v1833_v4 = vcombine.low %v1822_v0, %v1825_v1  ;;  %v434_v5 = vshrl.u32 %v1822_v0, 16  ;;  %v437_v6 = vshll.u32 %v1822_v0, 16  ;;  %v1838_v7 = vld [vmem:[%s1819_s13 + $0x10] sm:$0xf]  ;;  %s1473_s19 = sshll.u32 %s1281_s18, 7 }
  0x1e   : > { %v347_v8 = vshll.u32 %v1838_v7, 16  ;;  %v351_v9 = vshrl.u32 %v1838_v7, 16  ;;  %v1844_v10 = vcombine.low %v1828_v2, %v1838_v7  ;;  %v338_v11 = vshrl.u32 %v1828_v2, 16  ;;  %v1848_v12 = vld [vmem:[%s1819_s13 + $0x48] sm:$0xf] }
  0x1f   : > { %771 = vrot.lane.b32.xlu1 %v1833_v4, %s1708_s14  ;;  %v341_v13 = vshll.u32 %v1828_v2, 16  ;;  %v1854_v14 = vld [vmem:[%s1819_s13 + $0x4c] sm:$0xf]  ;;  %v458_v15 = vshrl.u32 %v1848_v12, 16  ;;  %v461_v16 = vshll.u32 %v1848_v12, 16  ;;  %v1421_v17 = vrot.slane %v1822_v0, 9 }
  0x20   : > { %v1859_v18 = vrot.slane %v351_v9, 4  ;;  %763 = vrot.lane.b32.xlu0 %v1844_v10, %s1708_s14  ;;  %v340_v19 = vrot.slane %v338_v11, 4  ;;  %v471_v20 = vshrl.u32 %v1854_v14, 16  ;;  %v1866_v21 = vcombine.low %v1848_v12, %v1854_v14  ;;  %v1869_v22 = vld [vmem:[%s1819_s13 + $0x18] sm:$0xf] }
  0x21   : > { %v343_v23 = vrot.slane %v341_v13, 5  ;;  %v1872_v24 = vld [vmem:[%s1819_s13 + $0x1c] sm:$0xf]  ;;  %v362_v25 = vshrl.u32 %v1869_v22, 16  ;;  %v365_v26 = vshll.u32 %v1869_v22, 16  ;;  %v569_v27 = vrot.slane %v1825_v1, 5 }
  0x22   : > { %v375_v28 = vshrl.u32 %v1872_v24, 16  ;;  %v1880_v29 = vcombine.low %v1869_v22, %v1872_v24  ;;  %v1883_v30 = vld [vmem:[%s1819_s13 + $0x30] sm:$0xf]  ;;  %v1886_v31 = vld [vmem:[%s1819_s13 + $0x34] sm:$0xf]  ;;  %v1417_v33 = vrot.slane %v1828_v2, 9 }
  0x23   : > { %773 = vrot.lane.b32.xlu1 %v1866_v21, %s1708_s14  ;;  %v1898_v34 = vld [vmem:[%s1819_s13 + $0x38] sm:$0x1]  ;;  %v1420_v35 = vrot.slane %v1883_v30, 9  ;;  %v562_v36 = vrot.slane %v1886_v31, 5  ;;  %v1903_v37 = vld [vmem:[%s1819_s13] sm:$0xf]  ;;  %v344_v38 = vor.u32 %v343_v23, %v340_v19  ;;  %v570_v43 = vsel %vm1890_vm4, %v1421_v17, %v569_v27 }
  0x24   : > { %765 = vrot.lane.b32.xlu0 %v1880_v29, %s1708_s14  ;;  %v565_v39 = vrot.slane %v1898_v34, 5  ;;  %v1909_v40 = vld [vmem:[%s1819_s13 + $0x4] sm:$0xf]  ;;  %v282_v41 = vld [vmem:[%s1819_s13 + $0x8] sm:$0x1]  ;;  %v1416_v42 = vrot.slane %v1903_v37, 9  ;;  %v1917_v44 = vcombine.low %v1883_v30, %v1886_v31 }
  0x25   : > { %v563_v45 = vsel %vm1890_vm4, %v1420_v35, %v562_v36  ;;  %v564_v46 = vrot.slane %v562_v36, 4  ;;  %v534_v47 = vrot.slane %v1909_v40, 5  ;;  %v537_v48 = vrot.slane %v282_v41, 5  ;;  %v1923_v49 = vld [vmem:[%s1819_s13 + $0x44] sm:$0x1] }
  0x26   : > { %v571_v50 = vrot.slane %v569_v27, 4  ;;  %v572_v51 = vrot.slane %v1923_v49, 5  ;;  %v285_v52 = vld [vmem:[%s1819_s13 + $0x14] sm:$0x1]  ;;  %v541_v53 = vrot.slane %v1838_v7, 5  ;;  %v345_v54 = vrot.slane %v344_v38, 4 }
  0x27   : > { %v566_v55 = vsel %vm1890_vm4, %v564_v46, %v565_v39  ;;  %v535_v56 = vsel %vm1890_vm4, %v1416_v42, %v534_v47  ;;  %v536_v57 = vrot.slane %v534_v47, 4  ;;  %v544_v58 = vrot.slane %v285_v52, 5 }
  0x28   : > { %v1932_v59 = vcombine.low %v563_v45, %v566_v55  ;;  %v573_v60 = vsel %vm1890_vm4, %v571_v50, %v572_v51  ;;  %v542_v61 = vsel %vm1890_vm4, %v1417_v33, %v541_v53  ;;  %v543_v62 = vrot.slane %v541_v53, 4 }
  0x29   : > { %v538_v2 = vsel %vm1890_vm4, %v536_v57, %v537_v48  ;;  %v1946_v9 = vcombine.low %v570_v43, %v573_v60  ;;  %v349_v11 = vrot.slane %v347_v8, 5  ;;  %v357_v13 = vshll.u32 %v285_v52, 16 }
  0x2a   : > { %752 = vrot.lane.b32.xlu1 %v1932_v59, %s1709_s23  ;;  %v1442_v17 = vcombine.low %v535_v56, %v538_v2  ;;  %v545_v19 = vsel %vm1890_vm4, %v543_v62, %v544_v58  ;;  %v314_v23 = vshrl.u32 %v1903_v37, 16  ;;  %v317_v27 = vshll.u32 %v1903_v37, 16 }
  0x2b   : > { %v1956_v33 = vcombine.low %v542_v61, %v545_v19  ;;  %v350_v35 = vsel %vm1940_vm5, %v345_v54, %v349_v11  ;;  %v354_v7 = vor.u32 %v1859_v18, %v349_v11  ;;  %v359_v8 = vrot.slane %v357_v13, 5 }
  0x2c   : > { %744 = vrot.lane.b32.xlu0 %v1442_v17, %s1709_s23  ;;  %v316_v36 = vrot.slane %v314_v23, 4  ;;  %v319_v38 = vrot.slane %v317_v27, 5  ;;  %v323_v39 = vshll.u32 %v1909_v40, 16  ;;  %v327_v42 = vshrl.u32 %v1909_v40, 16 }
  0x2d   : > { %v355_v43 = vrot.slane %v354_v7, 4  ;;  %v333_v45 = vshll.u32 %v282_v41, 16  ;;  %v436_v46 = vrot.slane %v434_v5, 4  ;;  %v439_v47 = vrot.slane %v437_v6, 5 }
  0x2e   : > { %754 = vrot.lane.b32.xlu1 %v1946_v9, %s1709_s23  ;;  %v320_v18 = vor.u32 %v319_v38, %v316_v36  ;;  %v325_v48 = vrot.slane %v323_v39, 5  ;;  %v329_v50 = vrot.slane %v327_v42, 4  ;;  %v443_v51 = vshll.u32 %v1825_v1, 16 }
  0x2f   : > { %v360_v52 = vsel %vm1940_vm5, %v355_v43, %v359_v8  ;;  %v335_v53 = vrot.slane %v333_v45, 5  ;;  %v440_v54 = vor.u32 %v439_v47, %v436_v46  ;;  %v449_v41 = vrot.slane %v447_v3, 4  ;;  %v300_v8 = vld [vmem:[%s1819_s13 + $0x50] sm:$0x1] }
  0x30   : > { %746 = vrot.lane.b32.xlu0 %v1956_v33, %s1709_s23  ;;  %v1977_v0 = vcombine.low %v350_v35, %v360_v52  ;;  %v321_v5 = vrot.slane %v320_v18, 4  ;;  %v330_v6 = vor.u32 %v329_v50, %v325_v48  ;;  %v445_v55 = vrot.slane %v443_v51, 5  ;;  %v2007_v50 = vld [vmem:[%s1819_s13 + $0x20] sm:$0x1] }
  0x31   : > { %v441_v56 = vrot.slane %v440_v54, 4  ;;  %v453_v57 = vshll.u32 %v1923_v49, 16  ;;  %v410_v58 = vshrl.u32 %v1883_v30, 16  ;;  %v413_v60 = vshll.u32 %v1883_v30, 16 }
  0x32   : > { %706 = vrot.lane.b32.xlu1 %v1977_v0, %s1710_s24  ;;  %v326_v1 = vsel %vm1940_vm5, %v321_v5, %v325_v48  ;;  %v331_v3 = vrot.slane %v330_v6, 4  ;;  %v450_v61 = vor.u32 %v449_v41, %v445_v55  ;;  %v419_v62 = vshll.u32 %v1886_v31, 16 }
  0x33   : > { %v446_v2 = vsel %vm1940_vm5, %v441_v56, %v445_v55  ;;  %v455_v49 = vrot.slane %v453_v57, 5  ;;  %v412_v11 = vrot.slane %v410_v58, 4  ;;  %v415_v13 = vrot.slane %v413_v60, 5 }
  0x34   : > { %v336_v30 = vsel %vm1940_vm5, %v331_v3, %v335_v53  ;;  %v451_v17 = vrot.slane %v450_v61, 4  ;;  %v421_v19 = vrot.slane %v419_v62, 5  ;;  %v423_v23 = vshrl.u32 %v1886_v31, 16  ;;  %v2030_v61 = vld [vmem:[%s1819_s13 + $0x54] sm:$0xf] }
  0x35   : > { %v1434_v27 = vcombine.low %v326_v1, %v336_v30  ;;  %v416_v35 = vor.u32 %v415_v13, %v412_v11  ;;  %v429_v7 = vshll.u32 %v1898_v34, 16  ;;  %v460_v36 = vrot.slane %v458_v15, 4 }
  0x36   : > { %v456_v38 = vsel %vm1940_vm5, %v451_v17, %v455_v49  ;;  %v425_v39 = vrot.slane %v423_v23, 4  ;;  %v463_v42 = vrot.slane %v461_v16, 5  ;;  %v467_v43 = vshll.u32 %v1854_v14, 16  ;;  %v2041_v17 = vld [vmem:[%s1819_s13 + $0x58] sm:$0xf] }
  0x37   : > { %704 = vrot.lane.b32.xlu0 %v1434_v27, %s1710_s24  ;;  %v2002_v31 = vcombine.low %v446_v2, %v456_v38  ;;  %v417_v45 = vrot.slane %v416_v35, 4  ;;  %v431_v34 = vrot.slane %v429_v7, 5  ;;  %v473_v46 = vrot.slane %v471_v20, 4 }
  0x38   : > { %v426_v47 = vor.u32 %v425_v39, %v421_v19  ;;  %v464_v15 = vor.u32 %v463_v42, %v460_v36  ;;  %v469_v18 = vrot.slane %v467_v43, 5  ;;  %v477_v48 = vshll.u32 %v300_v8, 16 }
  0x39   : > { %714 = vrot.lane.b32.xlu1 %v2002_v31, %s1710_s24  ;;  %v422_v16 = vsel %vm1940_vm5, %v417_v45, %v421_v19  ;;  %v364_v51 = vrot.slane %v362_v25, 4  ;;  %v367_v52 = vrot.slane %v365_v26, 5  ;;  %v371_v20 = vshll.u32 %v1872_v24, 16 }
  0x3a   : > { %v427_v53 = vrot.slane %v426_v47, 4  ;;  %v465_v54 = vrot.slane %v464_v15, 4  ;;  %v474_v41 = vor.u32 %v473_v46, %v469_v18  ;;  %v479_v5 = vrot.slane %v477_v48, 5 }
  0x3b   : > { %v368_v6 = vor.u32 %v367_v52, %v364_v51  ;;  %v373_v55 = vrot.slane %v371_v20, 5  ;;  %v377_v56 = vrot.slane %v375_v28, 4  ;;  %v381_v57 = vshll.u32 %v2007_v50, 16 }
  0x3c   : > { %v432_v25 = vsel %vm1940_vm5, %v427_v53, %v431_v34  ;;  %v470_v26 = vsel %vm1940_vm5, %v465_v54, %v469_v18  ;;  %v475_v58 = vrot.slane %v474_v41, 4  ;;  %v1422_v2 = vrot.slane %v1848_v12, 9  ;;  %v2048_v12 = vld [vmem:[%s1819_s13 + $0x24] sm:$0xf]  ;;  %v2077_v18 = vld [vmem:[%s1819_s13 + $0x5c] sm:$0x1] }
  0x3d   : > { %v2025_v60 = vcombine.low %v422_v16, %v432_v25  ;;  %790 = vrot.lane.b32.xlu1 %v2002_v31, %s1711_s27  ;;  %v369_v1 = vrot.slane %v368_v6, 4  ;;  %v378_v3 = vor.u32 %v377_v56, %v373_v55  ;;  %v383_v28 = vrot.slane %v381_v57, 5  ;;  %v2086_v41 = vld [vmem:[%s1819_s13 + $0x2c] sm:$0x1] }
  0x3e   : > { %v480_v62 = vsel %vm1940_vm5, %v475_v58, %v479_v5  ;;  %v576_v49 = vrot.slane %v1854_v14, 5  ;;  %v579_v11 = vrot.slane %v300_v8, 5  ;;  %v548_v27 = vrot.slane %v1872_v24, 5  ;;  %v2056_v8 = vld [vmem:[%s1819_s13 + $0x28] sm:$0xf] }
  0x3f   : > { %712 = vrot.lane.b32.xlu0 %v2025_v60, %s1710_s24  ;;  %v2038_v13 = vcombine.low %v470_v26, %v480_v62  ;;  %v379_v30 = vrot.slane %v378_v3, 4  ;;  %v374_v19 = vsel %vm1940_vm5, %v369_v1, %v373_v55  ;;  %v482_v35 = vshrl.u32 %v2030_v61, 16  ;;  %v2104_v62 = vld [vmem:[%s1819_s13 + $0x60] sm:$0xf] }
  0x40   : > { %v578_v23 = vrot.slane %v576_v49, 4  ;;  %v485_v7 = vshll.u32 %v2030_v61, 16  ;;  %v577_v36 = vsel %vm1890_vm4, %v1422_v2, %v576_v49  ;;  %v495_v38 = vshrl.u32 %v2041_v17, 16 }
  0x41   : > { %792 = vrot.lane.b32.xlu1 %v2038_v13, %s1711_s27  ;;  %v384_v14 = vsel %vm1940_vm5, %v379_v30, %v383_v28  ;;  %v1418_v42 = vrot.slane %v1869_v22, 9  ;;  %v386_v43 = vshrl.u32 %v2048_v12, 16  ;;  %v389_v45 = vshll.u32 %v2048_v12, 16 }
  0x42   : > { %v580_v24 = vsel %vm1890_vm4, %v578_v23, %v579_v11  ;;  %v2065_v39 = vcombine.low %v374_v19, %v384_v14  ;;  %v550_v34 = vrot.slane %v548_v27, 4  ;;  %v551_v46 = vrot.slane %v2007_v50, 5  ;;  %v2107_v11 = vld [vmem:[%s1819_s13 + $0x64] sm:$0xf] }
  0x43   : > { %782 = vrot.lane.b32.xlu0 %v1977_v0, %s1711_s27  ;;  %v399_v47 = vshrl.u32 %v2056_v8, 16  ;;  %v484_v15 = vrot.slane %v482_v35, 4  ;;  %v2074_v0 = vcombine.low %v577_v36, %v580_v24  ;;  %v487_v22 = vrot.slane %v485_v7, 5  ;;  %v306_v36 = vld [vmem:[%s1819_s13 + $0x68] sm:$0x1] }
  0x44   : > { %v491_v48 = vshll.u32 %v2041_v17, 16  ;;  %v497_v16 = vrot.slane %v495_v38, 4  ;;  %v388_v51 = vrot.slane %v386_v43, 4  ;;  %v391_v52 = vrot.slane %v389_v45, 5  ;;  %v2139_v45 = vld [vmem:[%s1819_s13 + $0x6c] sm:$0xf] }
  0x45   : > { %809 = vrot.lane.b32.xlu1 %v1946_v9, %s1712_s30  ;;  %v395_v50 = vshll.u32 %v2056_v8, 16  ;;  %v549_v20 = vsel %vm1890_vm4, %v1418_v42, %v548_v27  ;;  %v488_v53 = vor.u32 %v487_v22, %v484_v15  ;;  %v401_v5 = vrot.slane %v399_v47, 4  ;;  %v2145_v22 = vld [vmem:[%s1819_s13 + $0x70] sm:$0xf] }
  0x46   : > { %v493_v54 = vrot.slane %v491_v48, 5  ;;  %v552_v6 = vsel %vm1890_vm4, %v550_v34, %v551_v46  ;;  %v501_v55 = vshll.u32 %v2077_v18, 16  ;;  %v392_v56 = vor.u32 %v391_v52, %v388_v51 }
  0x47   : > { %784 = vrot.lane.b32.xlu0 %v2065_v39, %s1711_s27  ;;  %v2091_v57 = vrot.slane %v395_v50, 5  ;;  %v405_v26 = vshll.u32 %v2086_v41, 16  ;;  %v2098_v58 = vcombine.low %v549_v20, %v552_v6  ;;  %v489_v1 = vrot.slane %v488_v53, 4  ;;  %v1609_v50 = vld [vmem:[%s2513_s1] sm:$0xff]  }
  0x48   : > { %v498_v25 = vor.u32 %v497_v16, %v493_v54  ;;  %v2100_v3 = vrot.slane %v392_v56, 4  ;;  %v503_v49 = vrot.slane %v501_v55, 5  ;;  %v2117_v30 = vcombine.low %v2048_v12, %v2056_v8  ;;  %1488 = vmatprep.subr.bf16.mxu0 %v1609_v50  ;;  %1510 = vmatprep.subr.bf16.mxu1 %v1609_v50 }
  0x49   : > { %811 = vrot.lane.b32.xlu1 %v2074_v0, %s1712_s30  ;;  %v402_v28 = vor.u32 %v401_v5, %v2091_v57  ;;  %v1423_v19 = vrot.slane %v2030_v61, 9  ;;  %v583_v23 = vrot.slane %v2041_v17, 5  ;;  %v2121_v27 = vrot.slane %v405_v26, 5  ;;  %1489 = vmatpush3.bf16.msra.mxu0 %v1609_v50 }
  0x4a   : > { %v499_v2 = vrot.slane %v498_v25, 4  ;;  %v586_v35 = vrot.slane %v2077_v18, 5  ;;  %v589_v14 = vshrl.u32 %v2104_v62, 16  ;;  %v592_v7 = vshll.u32 %v2104_v62, 16  ;;  %1513 = vmatpush3.bf16.msra.mxu1 %v1609_v50 }
  0x4b   : > { %801 = vrot.lane.b32.xlu0 %v1956_v33, %s1712_s30  ;;  %v2113_v33 = vcombine.low %v2030_v61, %v2041_v17  ;;  %v494_v24 = vsel %vm1940_vm5, %v489_v1, %v493_v54  ;;  %v398_v38 = vsel %vm1940_vm5, %v2100_v3, %v2091_v57  ;;  %v2135_v42 = vrot.slane %v402_v28, 4 }
  0x4c   : > { %v602_v43 = vshrl.u32 %v2107_v11, 16  ;;  %v504_v34 = vsel %vm1940_vm5, %v499_v2, %v503_v49  ;;  %v591_v46 = vrot.slane %v589_v14, 4  ;;  %v594_v47 = vrot.slane %v592_v7, 5  ;;  %v309_v49 = vld [vmem:[%s1819_s13 + $0x74] sm:$0x1] }
  0x4d   : > { %828 = vrot.lane.b32.xlu1 %v1866_v21, %s1713_s5  ;;  %v598_v15 = vshll.u32 %v2107_v11, 16  ;;  %v608_v16 = vshll.u32 %v306_v36, 16  ;;  %v1424_v51 = vrot.slane %v2104_v62, 9  ;;  %v617_v52 = vrot.slane %v2107_v11, 5 }
  0x4e   : > { %v604_v48 = vrot.slane %v602_v43, 4  ;;  %v595_v20 = vor.u32 %v594_v47, %v591_v46  ;;  %v620_v54 = vrot.slane %v306_v36, 5  ;;  %v623_v5 = vshrl.u32 %v2139_v45, 16  ;;  %v1610_v43 = vld [vmem:[%s2513_s1 + $0x8] sm:$0xff]  }
  0x4f   : > { %803 = vrot.lane.b32.xlu0 %v2098_v58, %s1712_s30  ;;  %v600_v53 = vrot.slane %v598_v15, 5  ;;  %v2157_v6 = vcombine.low %v494_v24, %v504_v34  ;;  %v618_v55 = vsel %vm1890_vm4, %v1424_v51, %v617_v52  ;;  %v619_v56 = vrot.slane %v617_v52, 4  ;;  %1490 = vmatprep.subr.bf16.mxu0 %v1610_v43 }
  0x50   : > { %v626_v25 = vshll.u32 %v2139_v45, 16  ;;  %v596_v26 = vrot.slane %v595_v20, 4  ;;  %v610_v28 = vrot.slane %v608_v16, 5  ;;  %v636_v2 = vshrl.u32 %v2145_v22, 16  ;;  %1511 = vmatprep.subr.bf16.mxu1 %v1610_v43  ;;  %1491 = vmatpush3.bf16.msra.mxu0 %v1610_v43 }
  0x51   : > { %830 = vrot.lane.b32.xlu1 %v2113_v33, %s1713_s5  ;;  %v605_v1 = vor.u32 %v604_v48, %v600_v53  ;;  %v621_v14 = vsel %vm1890_vm4, %v619_v56, %v620_v54  ;;  %v625_v7 = vrot.slane %v623_v5, 4  ;;  %v632_v24 = vshll.u32 %v2145_v22, 16  ;;  %1514 = vmatpush3.bf16.msra.mxu1 %v1610_v43 }
  0x52   : > { %v628_v36 = vrot.slane %v626_v25, 5  ;;  %v601_v34 = vsel %vm1940_vm5, %v596_v26, %v600_v53  ;;  %v2174_v47 = vcombine.low %v618_v55, %v621_v14  ;;  %v638_v15 = vrot.slane %v636_v2, 4  ;;  %v1611_v14 = vld [vmem:[%s2513_s1 + $0x10] ss:$0 sps:$4 sm:$0x33]  }
  0x53   : > { %820 = vrot.lane.b32.xlu0 %v1880_v29, %s1713_s5  ;;  %v606_v46 = vrot.slane %v605_v1, 4  ;;  %v634_v16 = vrot.slane %v632_v24, 5  ;;  %v642_v51 = vshll.u32 %v309_v49, 16  ;;  %v1425_v52 = vrot.slane %v2139_v45, 9  ;;  %1516 = vmatprep.subr.msk.bf16.mxu0 %vm1055_vm6, %v1611_v14 }
  0x54   : > { %v629_v48 = vor.u32 %v628_v36, %v625_v7  ;;  %v408_v50 = vsel %vm1940_vm5, %v2135_v42, %v2121_v27  ;;  %v651_v53 = vrot.slane %v2145_v22, 5  ;;  %v654_v54 = vrot.slane %v309_v49, 5  ;;  %1517 = vmatprep.subr.msk.bf16.mxu1 %vm1055_vm6, %v1611_v14 }
  0x55   : > { %847 = vrot.lane.b32.xlu1 %v2038_v13, %s1714_s9  ;;  %v611_v20 = vsel %vm1940_vm5, %v606_v46, %v610_v28  ;;  %v639_v56 = vor.u32 %v638_v15, %v634_v16  ;;  %v644_v25 = vrot.slane %v642_v51, 5  ;;  %v585_v27 = vrot.slane %v583_v23, 4 }
  0x56   : > { %v2188_v5 = vcombine.low %v601_v34, %v611_v20  ;;  %v630_v55 = vrot.slane %v629_v48, 4  ;;  %v2194_v42 = vsel %vm1890_vm4, %v1425_v52, %v651_v53  ;;  %v653_v26 = vrot.slane %v651_v53, 4 }
  0x57   : > { %822 = vrot.lane.b32.xlu0 %v2117_v30, %s1713_s5  ;;  %v1426_v1 = vcombine.low %v1903_v37, %v1909_v40  ;;  %v1437_v28 = vcombine.low %v398_v38, %v408_v50  ;;  %v640_v49 = vrot.slane %v639_v56, 4  ;;  %v555_v7 = vrot.slane %v2056_v8, 5 }
  0x58   : > { %v635_v2 = vsel %vm1940_vm5, %v630_v55, %v634_v16  ;;  %v2213_v36 = vsel %vm1890_vm4, %v653_v26, %v654_v54  ;;  %v584_v8 = vsel %vm1890_vm4, %v1423_v19, %v583_v23  ;;  %v587_v38 = vsel %vm1890_vm4, %v585_v27, %v586_v35 }
  0x59   : > { %849 = vrot.lane.b32.xlu1 %v2157_v6, %s1714_s9  ;;  %v645_v57 = vsel %vm1940_vm5, %v640_v49, %v644_v25  ;;  %v1455_v3 = vcombine.low %v2194_v42, %v2213_v36  ;;  %v1057_v63 = vsel %vm1055_vm6, %v1611_v14, 0  ;;  %v1419_v43 = vrot.slane %v2048_v12, 9 }
  0x5a   : > { %v1454_v24 = vcombine.low %v635_v2, %v645_v57  ;;  %v557_v34 = vrot.slane %v555_v7, 4  ;;  %v558_v17 = vrot.slane %v2086_v41, 5  ;;  %1493 = vmatpush3.bf16.msra.mxu0 %v1057_v63  ;;  %v1449_v61 = vcombine.low %v584_v8, %v587_v38  ;;  %1515 = vmatpush3.bf16.msra.mxu1 %v1057_v63 }
  0x5b   : > { %839 = vrot.lane.b32.xlu0 %v2065_v39, %s1714_s9  ;;  %v556_v18 = vsel %vm1890_vm4, %v1419_v43, %v555_v7  ;;  %v1450_v32 = vcombine.low %v2104_v62, %v2107_v11 }
  0x5c   : > { %v559_v19 = vsel %vm1890_vm4, %v557_v34, %v558_v17 }
  0x5d   : > { %866 = vrot.lane.b32.xlu1 %v2074_v0, %s1715_s6  ;;  %v1445_v12 = vcombine.low %v556_v18, %v559_v19 }
  0x5f   : > { %841 = vrot.lane.b32.xlu0 %v1437_v28, %s1714_s9 }
  0x61   : > { %716 = vrot.lane.b32.xlu1 %v2038_v13, %s1710_s24  ;;  %v1453_v13 = vcombine.low %v2139_v45, %v2145_v22 }
  0x63   : > { %858 = vrot.lane.b32.xlu0 %v2098_v58, %s1715_s6 }
  0x65   : > { %868 = vrot.lane.b32.xlu1 %v1449_v61, %s1715_s6 }
  0x67   : > { %708 = vrot.lane.b32.xlu0 %v2065_v39, %s1710_s24 }
  0x69   : > { %718 = vrot.lane.b32.xlu1 %v2157_v6, %s1710_s24 }
  0x6b   : > { %860 = vrot.lane.b32.xlu0 %v1445_v12, %s1715_s6 }
  0x6d   : > { %756 = vrot.lane.b32.xlu1 %v2074_v0, %s1709_s23 }
  0x6f   : > { %710 = vrot.lane.b32.xlu0 %v1437_v28, %s1710_s24 }
  0x71   : > { %758 = vrot.lane.b32.xlu1 %v1449_v61, %s1709_s23 }
  0x73   : > { %748 = vrot.lane.b32.xlu0 %v2098_v58, %s1709_s23 }
  0x75   : > { %775 = vrot.lane.b32.xlu1 %v2113_v33, %s1708_s14 }
  0x77   : > { %750 = vrot.lane.b32.xlu0 %v1445_v12, %s1709_s23 }
  0x79   : > { %777 = vrot.lane.b32.xlu1 %v1450_v32, %s1708_s14 }
  0x7b   : > { %767 = vrot.lane.b32.xlu0 %v2117_v30, %s1708_s14 }
  0x7d   : > { %794 = vrot.lane.b32.xlu1 %v2157_v6, %s1711_s27 }
  0x7f   : > { %769 = vrot.lane.b32.xlu0 %v1917_v44, %s1708_s14  ;;  %s2450_s14 = scalar_lea.hbm %s2516_s4, %s1473_s19 }
  0x81   : > { %796 = vrot.lane.b32.xlu1 %v2188_v5, %s1711_s27 }
  0x83   : > { %786 = vrot.lane.b32.xlu0 %v1437_v28, %s1711_s27 }
  0x85   : > { %813 = vrot.lane.b32.xlu1 %v1449_v61, %s1712_s30 }
  0x87   : > { %788 = vrot.lane.b32.xlu0 %v2025_v60, %s1711_s27  ;;  %s256_s27 = sand.u32 1, %s1682_s16  }
  0x88   : > { %s1413_s8 = sshll.u32 %s256_s27, 7  ;;  %s2459_s24 = scalar_lea.sflag [#allocation3], %s256_s27 }
  0x89   : > { %815 = vrot.lane.b32.xlu1 %v2174_v47, %s1712_s30 }
  0x8b   : > { %805 = vrot.lane.b32.xlu0 %v1445_v12, %s1712_s30 }
  0x8d   : > { %832 = vrot.lane.b32.xlu1 %v1450_v32, %s1713_s5 }
  0x8f   : > { %807 = vrot.lane.b32.xlu0 %v1932_v59, %s1712_s30 }
  0x91   : > { %834 = vrot.lane.b32.xlu1 %v1453_v13, %s1713_s5  ;;  %v772_v39 = vpop.permute.xlu1 %771 }
  0x92   : > { %v764_v0 = vpop.permute.xlu0 %763 }
  0x93   : > { %824 = vrot.lane.b32.xlu0 %v1917_v44, %s1713_s5 }
  0x95   : > { %851 = vrot.lane.b32.xlu1 %v2188_v5, %s1714_s9  ;;  %v774_v41 = vpop.permute.xlu1 %773 }
  0x96   : > { %v2288_v58 = vpop.permute.xlu0 %765 }
  0x97   : > { %826 = vrot.lane.b32.xlu0 %v1833_v4, %s1713_s5  ;;  %s1716_s5 = smov [#allocation2]  }
  0x99   : > { %853 = vrot.lane.b32.xlu1 %v1454_v24, %s1714_s9 }
  0x9b   : > { %843 = vrot.lane.b32.xlu0 %v2025_v60, %s1714_s9 }
  0x9c   : > { %v753_v62 = vpop.permute.xlu1 %752 }
  0x9d   : > { %870 = vrot.lane.b32.xlu1 %v2174_v47, %s1715_s6 }
  0x9e   : > { %v745_v11 = vpop.permute.xlu0 %744 }
  0x9f   : > { %845 = vrot.lane.b32.xlu0 %v2002_v31, %s1714_s9  ;;  %s2406_s9 = scalar_lea.vmem [#allocation2], %s1413_s8  ;;  %s1616_s8 = sshll.u32 %s1716_s5, 4  ;;  %s1617_s8 = int_to_ptr.vmem [resolvable:$false] %s1616_s8 }
  0xa0   : > { %v755_v23 = vpop.permute.xlu1 %754  ;;  %s1284_s12 = sshll.u32 %s2406_s9, 4  ;;  %s1618_s10 = scalar_lea.vmem %s1617_s8, 4096  ;;  %s2453_s12 = int_to_ptr.vmem [resolvable:$true] %s1284_s12 }
  0xa1   : > { %872 = vrot.lane.b32.xlu1 %v1455_v3, %s1715_s6  ;;  %s1612_s30 = scalar_lea.vmem %s2453_s12, 2048  ;;  %p1619_p2 = scmp.lt.s32.totalorder %s2453_s12, %s1617_s8 }
  0xa2   : > { %v747_v35 = vpop.permute.xlu0 %746  ;;  %p1613_p13 = scmp.ne.s32.totalorder %s2453_s12, %s1612_s30  ;;  %p1620_p4 = scmp.lt.s32.totalorder %s1618_s10, %s1612_s30 }
  0xa3   : > { %862 = vrot.lane.b32.xlu0 %v1932_v59, %s1715_s6 }
  0xa4   : > { %v707_v45 = vpop.permute.xlu1 %706  ;;  %p1614_p0 = pnand %p1613_p13, %p1794_p3  ;;  %p1621_p5 = por %p1620_p4, %p1619_p2 }
  0xa5   : > { %v880_v36 = vsel %vm874_vm7, %v1844_v10, %v707_v45 }
  0xa6   : > { %v903_v17 = vsel %vm899_vm8, %v880_v36, %v747_v35  ;;  %p1615_p1 = pneg %p1614_p0 }
  0xa7   : > { %864 = vrot.lane.b32.xlu0 %v1946_v9, %s1715_s6  ;;  %v920_v32 = vsel %vm916_vm9, %v903_v17, %v2288_v58 }
  0xa8   : > { %p1622_p6 = pnand %p1621_p5, %p1615_p1 }
  0xa9   : > { %v705_v60 = vpop.permute.xlu0 %704 }
  0xaa   : > { %v877_v56 = vsel %vm874_vm7, %v1426_v1, %v705_v60 }
  0xab   : > { %v715_v22 = vpop.permute.xlu1 %714  ;;  %v901_v28 = vsel %vm899_vm8, %v877_v56, %v745_v11 }
  0xac   : > { %v892_v27 = vsel %vm874_vm7, %v1833_v4, %v715_v22  ;;  %v918_v14 = vsel %vm916_vm9, %v901_v28, %v764_v0 }
  0xad   : > { %v911_v1 = vsel %vm899_vm8, %v892_v27, %v755_v23 }
  0xae   : > { %v928_v57 = vsel %vm916_vm9, %v911_v1, %v774_v41 }
  0xaf   : > { %v791_v6 = vpop.permute.xlu1 %790 }
  0xb1   : > { %v713_v46 = vpop.permute.xlu0 %712 }
  0xb2   : > { %v889_v59 = vsel %vm874_vm7, %v1917_v44, %v713_v46 }
  0xb3   : > { %v793_v47 = vpop.permute.xlu1 %792  ;;  %v909_v9 = vsel %vm899_vm8, %v889_v59, %v753_v62 }
  0xb4   : > { %v926_v5 = vsel %vm916_vm9, %v909_v9, %v772_v39  ;;  %v945_v38 = vsel %vm933_vm10, %v928_v57, %v793_v47 }
  0xb5   : > { %v783_v15 = vpop.permute.xlu0 %782  ;;  %v943_v44 = vsel %vm933_vm10, %v926_v5, %v791_v6 }
  0xb6   : > { %v935_v4 = vsel %vm933_vm10, %v918_v14, %v783_v15 }
  0xb7   : > { %v810_v48 = vpop.permute.xlu1 %809 }
  0xb8   : > { %v960_v42 = vsel %vm950_vm11, %v943_v44, %v810_v48 }
  0xb9   : > { %v785_v31 = vpop.permute.xlu0 %784 }
  0xba   : > { %v937_v39 = vsel %vm933_vm10, %v920_v32, %v785_v31 }
  0xbb   : > { %v812_v16 = vpop.permute.xlu1 %811 }
  0xbc   : > { %v962_v63 = vsel %vm950_vm11, %v945_v38, %v812_v16 }
  0xbd   : > { %v802_v51 = vpop.permute.xlu0 %801 }
  0xbe   : > { %v952_v3 = vsel %vm950_vm11, %v935_v4, %v802_v51 }
  0xbf   : > { %v829_v52 = vpop.permute.xlu1 %828 }
  0xc0   : > { %v977_v2 = vsel %vm967_vm12, %v960_v42, %v829_v52 }
  0xc1   : > { %v804_v50 = vpop.permute.xlu0 %803 }
  0xc2   : > { %v954_v0 = vsel %vm950_vm11, %v937_v39, %v804_v50 }
  0xc3   : > { %v831_v20 = vpop.permute.xlu1 %830 }
  0xc4   : > { %v979_v61 = vsel %vm967_vm12, %v962_v63, %v831_v20 }
  0xc5   : > { %v821_v53 = vpop.permute.xlu0 %820 }
  0xc6   : > { %v969_v24 = vsel %vm967_vm12, %v952_v3, %v821_v53 }
  0xc7   : > { %v848_v54 = vpop.permute.xlu1 %847 }
  0xc8   : > { %v994_v37 = vsel %vm984_vm13, %v977_v2, %v848_v54 }
  0xc9   : > { %v823_v55 = vpop.permute.xlu0 %822 }
  0xca   : > { %v971_v62 = vsel %vm967_vm12, %v954_v0, %v823_v55 }
  0xcb   : > { %v850_v25 = vpop.permute.xlu1 %849 }
  0xcc   : > { %v996_v18 = vsel %vm984_vm13, %v979_v61, %v850_v25 }
  0xcd   : > { %v840_v26 = vpop.permute.xlu0 %839 }
  0xce   : > { %v986_v43 = vsel %vm984_vm13, %v969_v24, %v840_v26 }
  0xcf   : > { %v867_v40 = vpop.permute.xlu1 %866 }
  0xd0   : > { %v1011_v49 = vsel %vm1001_vm14, %v994_v37, %v867_v40 }
  0xd1   : > { %v842_v7 = vpop.permute.xlu0 %841  ;;  %1502 = vmatprep.mubr.msk.bf16.mxu1 %vm1038_vm15, %v1011_v49 }
  0xd2   : > { %v988_v11 = vsel %vm984_vm13, %v971_v62, %v842_v7 }
  0xd3   : > { %v717_v8 = vpop.permute.xlu1 %716 }
  0xd4   : > { %v895_v56 = vsel %vm874_vm7, %v1866_v21, %v717_v8 }
  0xd5   : > { %v859_v34 = vpop.permute.xlu0 %858 }
  0xd6   : > { %v1003_v10 = vsel %vm1001_vm14, %v986_v43, %v859_v34 }
  0xd7   : > { %1494 = vmatprep.mubr.msk.bf16.mxu0 %vm1038_vm15, %v1003_v10  ;;  %v869_v19 = vpop.permute.xlu1 %868 }
  0xd8   : > { %v1013_v12 = vsel %vm1001_vm14, %v996_v18, %v869_v19 }
  0xd9   : > { %v709_v13 = vpop.permute.xlu0 %708  ;;  %1503 = vmatmul.mubr.msk.bf16.vlgmr.msra.gmra.mrb[0].mxu1 %vm1038_vm15, %v1013_v12 }
  0xda   : > { %v883_v21 = vsel %vm874_vm7, %v1880_v29, %v709_v13 }
  0xdb   : > { %v719_v41 = vpop.permute.xlu1 %718 }
  0xdc   : > { %v898_v28 = vsel %vm874_vm7, %v2113_v33, %v719_v41 }
  0xdd   : > { %v861_v23 = vpop.permute.xlu0 %860 }
  0xde   : > { %v1005_v35 = vsel %vm1001_vm14, %v988_v11, %v861_v23  ;;  %v2387_v11 = vld [vmem:[%s2514_s2] ss:$0 sm:$0xff] }
  0xdf   : > { %1495 = vmatmul.mubr.msk.bf16.vlgmr.msra.gmra.mrb[0].mxu0 %vm1038_vm15, %v1005_v35  ;;  %v757_v45 = vpop.permute.xlu1 %756  ;;  %v2393_v23 = vld [vmem:[%s2515_s3] ss:$0 sm:$0xff] }
  0xe0   : > { %v913_v44 = vsel %vm899_vm8, %v895_v56, %v757_v45 }
  0xe1   : > { %v711_v60 = vpop.permute.xlu0 %710 }
  0xe2   : > { %v886_v24 = vsel %vm874_vm7, %v2117_v30, %v711_v60 }
  0xe3   : > { %v759_v58 = vpop.permute.xlu1 %758 }
  0xe4   : > { %v915_v40 = vsel %vm899_vm8, %v898_v28, %v759_v58 }
  0xe5   : > { %v749_v22 = vpop.permute.xlu0 %748 }
  0xe6   : > { %v905_v4 = vsel %vm899_vm8, %v883_v21, %v749_v22 }
  0xe7   : > { %v776_v6 = vpop.permute.xlu1 %775 }
  0xe8   : > { %v930_v27 = vsel %vm916_vm9, %v913_v44, %v776_v6 }
  0xe9   : > { %v751_v46 = vpop.permute.xlu0 %750 }
  0xea   : > { %v907_v17 = vsel %vm899_vm8, %v886_v24, %v751_v46 }
  0xeb   : > { %v778_v47 = vpop.permute.xlu1 %777 }
  0xec   : > { %v932_v49 = vsel %vm916_vm9, %v915_v40, %v778_v47 }
  0xed   : > { %v768_v15 = vpop.permute.xlu0 %767 }
  0xee   : > { %v922_v57 = vsel %vm916_vm9, %v905_v4, %v768_v15 }
  0xef   : > { %v795_v48 = vpop.permute.xlu1 %794 }
  0xf0   : > { %v947_v26 = vsel %vm933_vm10, %v930_v27, %v795_v48 }
  0xf1   : > { %v770_v31 = vpop.permute.xlu0 %769 }
  0xf2   : > { %v924_v18 = vsel %vm916_vm9, %v907_v17, %v770_v31 }
  0xf3   : > { %v797_v16 = vpop.permute.xlu1 %796 }
  0xf4   : > { %v949_v36 = vsel %vm933_vm10, %v932_v49, %v797_v16 }
  0xf5   : > { %v787_v51 = vpop.permute.xlu0 %786 }
  0xf6   : > { %v939_v29 = vsel %vm933_vm10, %v922_v57, %v787_v51 }
  0xf7   : > { %v814_v52 = vpop.permute.xlu1 %813 }
  0xf8   : > { %v964_v2 = vsel %vm950_vm11, %v947_v26, %v814_v52 }
  0xf9   : > { %v789_v50 = vpop.permute.xlu0 %788 }
  0xfa   : > { %v941_v30 = vsel %vm933_vm10, %v924_v18, %v789_v50 }
  0xfb   : > { %v816_v59 = vpop.permute.xlu1 %815 }
  0xfc   : > { %v966_v3 = vsel %vm950_vm11, %v949_v36, %v816_v59 }
  0xfd   : > { %v806_v20 = vpop.permute.xlu0 %805 }
  0xfe   : > { %v956_v63 = vsel %vm950_vm11, %v939_v29, %v806_v20 }
  0xff   : > { %v833_v53 = vpop.permute.xlu1 %832 }
 0x100   : > { %v981_v1 = vsel %vm967_vm12, %v964_v2, %v833_v53 }
 0x101   : > { %v808_v9 = vpop.permute.xlu0 %807 }
 0x102   : > { %v958_v13 = vsel %vm950_vm11, %v941_v30, %v808_v9 }
 0x103   : > { %v835_v54 = vpop.permute.xlu1 %834 }
 0x104   : > { %v983_v38 = vsel %vm967_vm12, %v966_v3, %v835_v54 }
 0x105   : > { %v825_v5 = vpop.permute.xlu0 %824 }
 0x106   : > { %v973_v61 = vsel %vm967_vm12, %v956_v63, %v825_v5 }
 0x107   : > { %v852_v55 = vpop.permute.xlu1 %851 }
 0x108   : > { %v998_v14 = vsel %vm984_vm13, %v981_v1, %v852_v55 }
 0x109   : > { %v827_v25 = vpop.permute.xlu0 %826 }
 0x10a   : > { %v975_v39 = vsel %vm967_vm12, %v958_v13, %v827_v25 }
 0x10b   : > { %v854_v42 = vpop.permute.xlu1 %853 }
 0x10c   : > { %v1000_v43 = vsel %vm984_vm13, %v983_v38, %v854_v42 }
 0x10d   : > { %v844_v37 = vpop.permute.xlu0 %843 }
 0x10e   : > { %v990_v19 = vsel %vm984_vm13, %v973_v61, %v844_v37 }
 0x10f   : > { %v871_v7 = vpop.permute.xlu1 %870 }
 0x110   : > { %v1015_v33 = vsel %vm1001_vm14, %v998_v14, %v871_v7 }
 0x111   : > { %v846_v8 = vpop.permute.xlu0 %845  ;;  %1506 = vmatprep.mubr.msk.bf16.mxu1 %vm1038_vm15, %v1015_v33 }
 0x112   : > { %v992_v0 = vsel %vm984_vm13, %v975_v39, %v846_v8 }
 0x113   : > { %v873_v34 = vpop.permute.xlu1 %872 }
 0x114   : > { %v1017_v10 = vsel %vm1001_vm14, %v1000_v43, %v873_v34 }
 0x115   : > { %v863_v12 = vpop.permute.xlu0 %862  ;;  %1507 = vmatmul.mubr.msk.bf16.gmra.mrb[4].mxu1 %vm1038_vm15, %v1017_v10 }
 0x116   : > { %v1007_v32 = vsel %vm1001_vm14, %v990_v19, %v863_v12 }
 0x117   : > { %1498 = vmatprep.mubr.msk.bf16.mxu0 %vm1038_vm15, %v1007_v32 }
 0x119   : > { %v865_v41 = vpop.permute.xlu0 %864 }
 0x11a   : > { %v1009_v62 = vsel %vm1001_vm14, %v992_v0, %v865_v41 }
 0x11b   : > { %1499 = vmatmul.mubr.msk.bf16.gmra.mrb[4].mxu0 %vm1038_vm15, %v1009_v62 }
 0x1ac   : > { %v1504_v35 = vpop.f32.mrb[0].mxu1 }
 0x1ad   : > { %v1173_v45 = vmul.f32 %v1504_v35, %v2387_v11  ;;  %v1125_v60 = vpop.f32.mrb[1].mxu1 }
 0x1ae   : > { %v1171_v58 = vmul.f32 %v2387_v11, %v1125_v60  ;;  %v1505_v22 = vpop.f32.mrb[2].mxu1 }
 0x1af   : > { %v1196_v6 = vadd.f32 %v2393_v23, %v1173_v45  ;;  %v1174_v46 = vmul.f32 %v1505_v22, %v2387_v11  ;;  %v1128_v47 = vpop.f32.mrb[3].mxu1 }
 0x1b0   : > { %v1194_v15 = vadd.f32 %v2393_v23, %v1171_v58  ;;  %v1172_v48 = vmul.f32 %v2387_v11, %v1128_v47 }
 0x1b1   : > { %vm1212_vm0 = vcmp.gt.f32.partialorder %v1196_v6, 0.0  ;;  %v1228_v31 = vmul.f32 0.1, %v1196_v6  ;;  %v1197_v16 = vadd.f32 %v2393_v23, %v1174_v46 }
 0x1b2   : > { %v1496_v51 = vpop.f32.mrb[0].mxu0  ;;  %vm1210_vm1 = vcmp.gt.f32.partialorder %v1194_v15, 0.0  ;;  %v1226_v52 = vmul.f32 0.1, %v1194_v15  ;;  %v1195_v50 = vadd.f32 %v2393_v23, %v1172_v48 }
 0x1b3   : > { %v1165_v59 = vmul.f32 %v1496_v51, %v2387_v11  ;;  %v1244_v20 = vsel %vm1212_vm0, %v1196_v6, %v1228_v31  ;;  %v1093_v53 = vpop.f32.mrb[1].mxu0  ;;  %vm1213_vm2 = vcmp.gt.f32.partialorder %v1197_v16, 0.0  ;;  %v1229_v9 = vmul.f32 0.1, %v1197_v16 }
 0x1b4   : > { %1260 = vst [vmem:[%s2406_s9 + $0x50] sm:$0xff] %v1244_v20  ;;  %v1163_v54 = vmul.f32 %v2387_v11, %v1093_v53  ;;  %v1242_v5 = vsel %vm1210_vm1, %v1194_v15, %v1226_v52  ;;  %v1497_v55 = vpop.f32.mrb[2].mxu0  ;;  %vm1211_vm3 = vcmp.gt.f32.partialorder %v1195_v50, 0.0  ;;  %v1227_v56 = vmul.f32 0.1, %v1195_v50 }
 0x1b5   : > { %v1188_v25 = vadd.f32 %v2393_v23, %v1165_v59  ;;  %1258 = vst [vmem:[%s2406_s9 + $0x40] sm:$0xff] %v1242_v5  ;;  %v1166_v44 = vmul.f32 %v1497_v55, %v2387_v11  ;;  %v1245_v27 = vsel %vm1213_vm2, %v1197_v16, %v1229_v9  ;;  %v1096_v42 = vpop.f32.mrb[3].mxu0 }
 0x1b6   : > { %v1186_v26 = vadd.f32 %v2393_v23, %v1163_v54  ;;  %1261 = vst [vmem:[%s2406_s9 + $0x58] sm:$0xff] %v1245_v27  ;;  %v1164_v28 = vmul.f32 %v2387_v11, %v1096_v42  ;;  %v1243_v2 = vsel %vm1211_vm3, %v1195_v50, %v1227_v56 }
 0x1b7   : > { %vm1204_vm4 = vcmp.gt.f32.partialorder %v1188_v25, 0.0  ;;  %v1220_v37 = vmul.f32 0.1, %v1188_v25  ;;  %v1189_v40 = vadd.f32 %v2393_v23, %v1166_v44  ;;  %1259 = vst [vmem:[%s2406_s9 + $0x48] sm:$0xff] %v1243_v2 }
 0x1b8   : > { %vm1202_vm5 = vcmp.gt.f32.partialorder %v1186_v26, 0.0  ;;  %v1218_v1 = vmul.f32 0.1, %v1186_v26  ;;  %v1187_v21 = vadd.f32 %v2393_v23, %v1164_v28 }
 0x1b9   : > { %v1236_v49 = vsel %vm1204_vm4, %v1188_v25, %v1220_v37  ;;  %vm1205_vm6 = vcmp.gt.f32.partialorder %v1189_v40, 0.0  ;;  %v1221_v14 = vmul.f32 0.1, %v1189_v40 }
 0x1ba   : > { %1252 = vst [vmem:[%s2406_s9 + $0x10] sm:$0xff] %v1236_v49  ;;  %v1234_v7 = vsel %vm1202_vm5, %v1186_v26, %v1218_v1  ;;  %vm1203_vm7 = vcmp.gt.f32.partialorder %v1187_v21, 0.0  ;;  %v1219_v4 = vmul.f32 0.1, %v1187_v21 }
 0x1bb   : > { %1250 = vst [vmem:[%s2406_s9] sm:$0xff] %v1234_v7  ;;  %v1237_v36 = vsel %vm1205_vm6, %v1189_v40, %v1221_v14 }
 0x1bc   : > { %1253 = vst [vmem:[%s2406_s9 + $0x18] sm:$0xff] %v1237_v36  ;;  %v1235_v33 = vsel %vm1203_vm7, %v1187_v21, %v1219_v4 }
 0x1bd   : > { %1251 = vst [vmem:[%s2406_s9 + $0x8] sm:$0xff] %v1235_v33 }
 0x1e8   : > { %v1508_v57 = vpop.f32.mrb[4].mxu1 }
 0x1e9   : > { %v1177_v3 = vmul.f32 %v1508_v57, %v2387_v11  ;;  %v1141_v8 = vpop.f32.mrb[5].mxu1 }
 0x1ea   : > { %v1175_v29 = vmul.f32 %v2387_v11, %v1141_v8  ;;  %v1509_v38 = vpop.f32.mrb[6].mxu1 }
 0x1eb   : > { %v1200_v24 = vadd.f32 %v2393_v23, %v1177_v3  ;;  %v1178_v63 = vmul.f32 %v1509_v38, %v2387_v11  ;;  %v1144_v43 = vpop.f32.mrb[7].mxu1 }
 0x1ec   : > { %v1198_v34 = vadd.f32 %v2393_v23, %v1175_v29  ;;  %v1176_v17 = vmul.f32 %v2387_v11, %v1144_v43 }
 0x1ed   : > { %vm1216_vm8 = vcmp.gt.f32.partialorder %v1200_v24, 0.0  ;;  %v1232_v61 = vmul.f32 0.1, %v1200_v24  ;;  %v1201_v10 = vadd.f32 %v2393_v23, %v1178_v63 }
 0x1ee   : > { %v1500_v18 = vpop.f32.mrb[4].mxu0  ;;  %vm1214_vm9 = vcmp.gt.f32.partialorder %v1198_v34, 0.0  ;;  %v1230_v19 = vmul.f32 0.1, %v1198_v34  ;;  %v1199_v12 = vadd.f32 %v2393_v23, %v1176_v17 }
 0x1ef   : > { %v1169_v30 = vmul.f32 %v1500_v18, %v2387_v11  ;;  %v1248_v32 = vsel %vm1216_vm8, %v1200_v24, %v1232_v61  ;;  %v1109_v13 = vpop.f32.mrb[5].mxu0  ;;  %vm1217_vm10 = vcmp.gt.f32.partialorder %v1201_v10, 0.0  ;;  %v1233_v39 = vmul.f32 0.1, %v1201_v10 }
 0x1f0   : > { %1264 = vst [vmem:[%s2406_s9 + $0x70] sm:$0xff] %v1248_v32  ;;  %v1167_v0 = vmul.f32 %v2387_v11, %v1109_v13  ;;  %v1246_v41 = vsel %vm1214_vm9, %v1198_v34, %v1230_v19  ;;  %v1501_v62 = vpop.f32.mrb[6].mxu0  ;;  %vm1215_vm11 = vcmp.gt.f32.partialorder %v1199_v12, 0.0  ;;  %v1231_v35 = vmul.f32 0.1, %v1199_v12 }
 0x1f1   : > { %v1192_v45 = vadd.f32 %v2393_v23, %v1169_v30  ;;  %1262 = vst [vmem:[%s2406_s9 + $0x60] sm:$0xff] %v1246_v41  ;;  %v1170_v60 = vmul.f32 %v1501_v62, %v2387_v11  ;;  %v1249_v58 = vsel %vm1217_vm10, %v1201_v10, %v1233_v39  ;;  %v1112_v22 = vpop.f32.mrb[7].mxu0 }
 0x1f2   : > { %v1190_v6 = vadd.f32 %v2393_v23, %v1167_v0  ;;  %1265 = vst [vmem:[%s2406_s9 + $0x78] sm:$0xff] %v1249_v58  ;;  %v1168_v46 = vmul.f32 %v2387_v11, %v1112_v22  ;;  %v1247_v47 = vsel %vm1215_vm11, %v1199_v12, %v1231_v35 }
 0x1f3   : > { %vm1208_vm12 = vcmp.gt.f32.partialorder %v1192_v45, 0.0  ;;  %v1224_v15 = vmul.f32 0.1, %v1192_v45  ;;  %v1193_v48 = vadd.f32 %v2393_v23, %v1170_v60  ;;  %1263 = vst [vmem:[%s2406_s9 + $0x68] sm:$0xff] %v1247_v47 }
 0x1f4   : > { %vm1206_vm13 = vcmp.gt.f32.partialorder %v1190_v6, 0.0  ;;  %v1222_v31 = vmul.f32 0.1, %v1190_v6  ;;  %v1191_v16 = vadd.f32 %v2393_v23, %v1168_v46 }
 0x1f5   : > { %v1240_v51 = vsel %vm1208_vm12, %v1192_v45, %v1224_v15  ;;  %vm1209_vm14 = vcmp.gt.f32.partialorder %v1193_v48, 0.0  ;;  %v1225_v11 = vmul.f32 0.1, %v1193_v48 }
 0x1f6   : > { %1256 = vst [vmem:[%s2406_s9 + $0x30] sm:$0xff] %v1240_v51  ;;  %v1238_v52 = vsel %vm1206_vm13, %v1190_v6, %v1222_v31  ;;  %vm1207_vm15 = vcmp.gt.f32.partialorder %v1191_v16, 0.0  ;;  %v1223_v50 = vmul.f32 0.1, %v1191_v16 }
 0x1f7   : > { %1254 = vst [vmem:[%s2406_s9 + $0x20] sm:$0xff] %v1238_v52  ;;  %v1241_v59 = vsel %vm1209_vm14, %v1193_v48, %v1225_v11 }
 0x1f8   : > { %1257 = vst [vmem:[%s2406_s9 + $0x38] sm:$0xff] %v1241_v59  ;;  %v1239_v23 = vsel %vm1207_vm15, %v1191_v16, %v1223_v50 }
 0x1f9   : > { %1255 = vst [vmem:[%s2406_s9 + $0x28] sm:$0xff] %v1239_v23 }
 0x1fa   : > { %1625 = shalt.err (!%p1622_p6)
}
 0x1fb   : > { %s1626_s27 = scalar_lea.hbm %s2450_s14, 2048  ;;  %s1630_s18 = scalar_lea.hbm %s2516_s4, 8192 }
 0x1fc   : > { %p1627_p7 = scmp.ne.s32.totalorder %s2450_s14, %s1626_s27  ;;  %p1631_p11 = scmp.lt.u32.totalorder %s2450_s14, %s2516_s4 }
 0x1fd   : > { %p1632_p12 = scmp.lt.u32.totalorder %s1630_s18, %s1626_s27  ;;  %p1634_p0 = scmp.lt.u32.totalorder %s1626_s27, %s2450_s14 }
 0x1fe   : > { %p1628_p9 = pnand %p1627_p7, %p1794_p3 }
 0x1ff   : > { %p1633_p13 = por %p1632_p12, %p1631_p11 }
 0x200   : > { %p1629_p10 = pneg %p1628_p9 }
 0x201   : > { %p1635_p1 = por %p1634_p0, %p1633_p13 }
 0x203   : > { %p1636_p2 = pnand %p1635_p1, %p1629_p10 }
 0x205   : > { %1639 = shalt.err (!%p1636_p2)
}
 0x206   : > { %s1717_s6 = smov 128  }
 0x207   : > { %1519 = dma.vmem_to_hbm [thread:$0]  (%p1794_p3), %s2453_s12, 2048, %s2450_s14, %s2459_s24, %s1717_s6, %s1717_s6, %s1709_s23  }
 0x208 PF: > { %p1525_p4 = scmp.ge.s32.totalorder %s1706_s22, 2  ;;  %s1299_s30 = sand.u32 1, %s1678_s15  }
 0x209   : > { %s1300_s5 = scalar_lea.sflag [#allocation3], %s1299_s30 }
 0x20a   : > { %p1522_p5 = pnand %p1525_p4, %p1803_p8 }
 0x20c   : > { %1673 = dma.done.wait (!%p1522_p5), %s1300_s5, 2048  }
 0x20d   : > { %1675 = vsyncadd (!%p1522_p5), %s1300_s5, 4294965248  ;;  %s17_s22 = sadd.s32 1, %s1706_s22   ;;  %s2523_s15 = smov %s1682_s16 }
 0x20e   : > { %p14_p6 = scmp.ge.s32.totalorder %s17_s22, 6   ;;  %s2524_s16 = smov %s1686_s17 }
 0x20f   : > { %s2525_s17 = smov %s1812_s7  ;;  %s2526_s18 = smov %s1698_s20 }
 0x210   : > { %s2527_s19 = smov %s1702_s21  ;;  %s2528_s20 = smov %s2531_s25 }
 0x211   : > { %s2529_s21 = smov %s2535_s26  ;;  %16 = sbr.rel (!%p14_p6) target bundleno = 5 (0x5), region = 80 }
 0x218   :  { %1305 = vsyncpa [#allocation3], 1 }
 0x219   :  { %1307 = vsyncpa [#allocation3 + $0x1], 1 }

</bundles_post_ra>
